<compile_context>
chip_gen: v6e
topology: v6e:2x2x1
jax: 0.10.0
libtpu: 0.0.40
codegen_flags: <defaults>
</compile_context>

<pallas_src>
import jax
import jax.numpy as jnp
import numpy as np
from jax.experimental import pallas as pl
from jax.experimental.pallas import tpu as pltpu

LANE = 128
# Byte budget for one input block + one output block.  Pallas double-buffers
# each, so peak block VMEM is ~2x this; 8 MiB -> ~16 MiB, comfortably inside
# the 32 MiB scoped limit requested below on every TPU generation.
DEFAULT_BLOCK_BUDGET_BYTES = 8 * 1024 * 1024
VMEM_LIMIT_BYTES = 32 * 1024 * 1024


def _round_up(x, m):
    return -(-x // m) * m


def _vmem_block_bytes(tile_b, t, tile_f, itemsize):
    """VMEM footprint of a (tile_b, t, tile_f) block, including (sublane,128)
    layout padding of the last two dims."""
    sublane = 8 * max(1, 4 // itemsize)  # f32 -> 8, bf16 -> 16, int8 -> 32
    return tile_b * _round_up(t, sublane) * _round_up(tile_f, LANE) * itemsize


def _choose_tiles(B, T_in, T_out, F, itemsize, budget):
    """Pick (tile_b, tile_f) so padded in+out blocks stay under `budget`."""
    per_batch = (_vmem_block_bytes(1, T_in, F, itemsize) +
                 _vmem_block_bytes(1, T_out, F, itemsize))
    if per_batch <= budget:
        return max(1, min(B, budget // per_batch)), F
    # A single batch row (after layout padding) exceeds the budget: tile the
    # feature axis in lane-aligned chunks.
    per_group = (_vmem_block_bytes(1, T_in, LANE, itemsize) +
                 _vmem_block_bytes(1, T_out, LANE, itemsize))
    n_groups = max(1, budget // per_group)
    tile_f = min(_round_up(F, LANE), n_groups * LANE)
    if tile_f >= F:
        tile_f = F
    return 1, tile_f


def _gather_rows_kernel(idx_ref, x_ref, o_ref):
    """o[:, t, :] = x[:, idx[t], :] for the current (batch, feature) block.

    idx_ref: SMEM scalar-prefetched (T_out,) int32 indices.
    x_ref:   VMEM (tile_b, T_in,  tile_f)
    o_ref:   VMEM (tile_b, T_out, tile_f)
    """
    t_out = o_ref.shape[1]
    if t_out <= 64:
        # Fully unrolled: static store offsets, dynamic (SMEM-driven) load rows.
        for t in range(t_out):
            src = idx_ref[t]
            o_ref[:, t:t + 1, :] = x_ref[:, pl.ds(src, 1), :]
    else:
        def body(t, carry):
            src = idx_ref[t]
            o_ref[:, pl.ds(t, 1), :] = x_ref[:, pl.ds(src, 1), :]
            return carry
        jax.lax.fori_loop(0, t_out, body, 0)


def _nearest_previous_index(input_ts, target_ts):
    """Exact argmax of the 1e5-temperature softmax used by the PyTorch module."""
    input_ts = input_ts.reshape(-1)
    target_ts = target_ts.reshape(-1)
    diff = input_ts.astype(jnp.float32)[:, None] - target_ts.astype(jnp.float32)[None, :]
    diff = jnp.where(diff > 0.0, -jnp.inf, diff)
    # TODO(synk): if a target timestamp precedes every input timestamp the
    # PyTorch reference yields NaN (all -inf column); argmax falls back to row
    # 0 here.  Exactly-duplicated input timestamps are averaged (0.5/0.5) by
    # the reference but resolved to a single index here.
    return jnp.argmax(diff, axis=0).astype(jnp.int32)  # (T_out,)


def _gather_time_rows(x, idx, *, block_budget_bytes=DEFAULT_BLOCK_BUDGET_BYTES):
    """out[:, t, ...] = x[:, idx[t], ...] for x of shape (B, T_in, *feat)."""
    B, T_in = int(x.shape[0]), int(x.shape[1])
    feat_shape = tuple(int(s) for s in x.shape[2:])
    T_out = int(idx.shape[0])
    F = 1
    for s in feat_shape:
        F *= s

    # (B, T_in, *feat) -> (B, T_in, F): trailing dims are contiguous, so this
    # reshape (and the inverse below) is metadata-only -- no extra HBM pass.
    x2 = x.reshape(B, T_in, F)
    itemsize = jnp.dtype(x.dtype).itemsize
    tile_b, tile_f = _choose_tiles(B, T_in, T_out, F, itemsize, block_budget_bytes)
    grid = (pl.cdiv(B, tile_b), pl.cdiv(F, tile_f))

    out2 = pl.pallas_call(
        _gather_rows_kernel,
        grid_spec=pltpu.PrefetchScalarGridSpec(
            num_scalar_prefetch=1,
            grid=grid,
            in_specs=[
                pl.BlockSpec((tile_b, T_in, tile_f),
                             lambda b, f, idx_ref: (b, 0, f)),
            ],
            out_specs=pl.BlockSpec((tile_b, T_out, tile_f),
                                   lambda b, f, idx_ref: (b, 0, f)),
        ),
        out_shape=jax.ShapeDtypeStruct((B, T_out, F), x.dtype),
        compiler_params=pltpu.CompilerParams(
            dimension_semantics=("parallel", "parallel"),
            vmem_limit_bytes=VMEM_LIMIT_BYTES),
    )(idx, x2)

    return out2.reshape((B, T_out) + feat_shape)


def zero_velocity_forward(input_data, nb_joints=None):
    """JAX/Pallas equivalent of ZeroVelocity.forward."""
    idx = _nearest_previous_index(input_data['input_frame_indices'],
                                  input_data['target_frame_indices'])

    if 'key_frame_indices' in input_data or 'joint_positions' in input_data:
        return _gather_time_rows(input_data['joint_positions'], idx)

    root = _gather_time_rows(input_data['root_positions'], idx)  # (B, T_out, 3)
    joint_positions = jnp.broadcast_to(
        root[:, :, None, :],
        root.shape[:2] + (nb_joints, root.shape[-1]))            # (B, T_out, J, 3)
    joint_rotations = _gather_time_rows(input_data['joint_rotations_ortho6d'], idx)
    return joint_positions, joint_rotations


# --------------------------------------------------------------------------
# Pure-JAX reference implementing the original softmax + matmul formula.
# --------------------------------------------------------------------------
def _softmax_weights_ref(input_ts, target_ts):
    diff = input_ts.reshape(-1).astype(jnp.float32)[:, None] - \
        target_ts.reshape(-1).astype(jnp.float32)[None, :]
    diff = jnp.where(diff > 0.0, -jnp.inf, diff)
    diff = diff - jnp.max(diff, axis=0, keepdims=True)
    return jax.nn.softmax(1e5 * diff, axis=0)  # (T_in, T_out)


def zero_velocity_ref(x, input_ts, target_ts):
    w = _softmax_weights_ref(input_ts, target_ts)        # (T_in, T_out)
    xt = jnp.moveaxis(x, 1, 0)                           # (T_in, B, *feat)
    out_t = jnp.tensordot(w, xt, axes=([0], [0]))        # (T_out, B, *feat)
    return jnp.moveaxis(out_t, 0, 1)                     # (B, T_out, *feat)


if __name__ == "__main__":
    key = jax.random.PRNGKey(0)
    B, T_in, T_out, J, D = 2, 6, 6, 4, 3

    input_frame_indices = jnp.array([0, 2, 4, 6, 8, 10], dtype=jnp.int32)
    target_frame_indices = jnp.array([0, 3, 4, 7, 9, 11], dtype=jnp.int32)

    k1, k2, k3, k4 = jax.random.split(key, 4)
    joint_positions = jax.random.normal(k1, (B, T_in, J, D), dtype=jnp.float32)

    # ----- branch 1: joint_positions present -----
    out = zero_velocity_forward({
        'input_frame_indices': input_frame_indices,
        'target_frame_indices': target_frame_indices,
        'joint_positions': joint_positions,
    })
    out = jax.block_until_ready(out)
    ref = zero_velocity_ref(joint_positions, input_frame_indices, target_frame_indices)
    np.testing.assert_allclose(np.asarray(out), np.asarray(ref), rtol=0, atol=1e-6)

    # ----- branch 2: root positions + joint rotations -----
    root_positions = jax.random.normal(k2, (B, T_in, D), dtype=jnp.float32)
    joint_rotations = jax.random.normal(k3, (B, T_in, J, 6), dtype=jnp.float32)
    jp, jr = zero_velocity_forward({
        'input_frame_indices': input_frame_indices,
        'target_frame_indices': target_frame_indices,
        'root_positions': root_positions,
        'joint_rotations_ortho6d': joint_rotations,
    }, nb_joints=J)
    jp, jr = jax.block_until_ready((jp, jr))

    root_ref = zero_velocity_ref(root_positions, input_frame_indices, target_frame_indices)
    jp_ref = jnp.repeat(root_ref[:, :, None, :], J, axis=2)
    jr_ref = zero_velocity_ref(joint_rotations, input_frame_indices, target_frame_indices)
    np.testing.assert_allclose(np.asarray(jp), np.asarray(jp_ref), rtol=0, atol=1e-6)
    np.testing.assert_allclose(np.asarray(jr), np.asarray(jr_ref), rtol=0, atol=1e-6)

    # ----- tiling stress path: force a multi-block grid + edge-masked f tile -----
    B2, T_in2, T_out2 = 4, 5, 7
    feat2 = (3, 70)  # F = 210 (not a multiple of 128)
    in_ts2 = jnp.arange(0, 2 * T_in2, 2, dtype=jnp.int32)
    tgt_ts2 = jnp.array([0, 1, 2, 5, 6, 8, 9], dtype=jnp.int32)
    x_big = jax.random.normal(k4, (B2, T_in2) + feat2, dtype=jnp.float32)
    idx2 = _nearest_previous_index(in_ts2, tgt_ts2)
    out_big = _gather_time_rows(x_big, idx2, block_budget_bytes=4096)
    out_big = jax.block_until_ready(out_big)
    ref_big = zero_velocity_ref(x_big, in_ts2, tgt_ts2)
    np.testing.assert_allclose(np.asarray(out_big), np.asarray(ref_big), rtol=0, atol=1e-6)

    print("KERNEL_OK")
</pallas_src>

<mosaic_0001>
module attributes {stable_mosaic.version = 11 : i64} {
  func.func @_gather_rows_kernel(%arg0: i32, %arg1: i32, %arg2: memref<6xi32, #tpu.memory_space<smem>>, %arg3: memref<2x6x12xf32, #tpu.memory_space<vmem>>, %arg4: memref<2x6x12xf32, #tpu.memory_space<vmem>>) attributes {dimension_semantics = [#tpu.dimension_semantics<parallel>, #tpu.dimension_semantics<parallel>], iteration_bounds = array<i64: 1, 1>, scalar_prefetch = 1 : i64, scratch_operands = 0 : i64, tpu.core_type = #tpu.core_type<tc>, window_params = [{transform_indices = @transform_0, window_bounds = array<i64: 2, 6, 12>}, {transform_indices = @transform_1, window_bounds = array<i64: 2, 6, 12>}]} {
    %c0 = arith.constant 0 : index
    %0 = memref.load %arg2[%c0] : memref<6xi32, #tpu.memory_space<smem>>
    %c0_0 = arith.constant 0 : index
    %1 = arith.index_cast %0 : i32 to index
    %c0_1 = arith.constant 0 : index
    %2 = vector.load %arg3[%c0_0, %1, %c0_1] : memref<2x6x12xf32, #tpu.memory_space<vmem>>, vector<2x1x12xf32>
    %c0_2 = arith.constant 0 : index
    %c0_3 = arith.constant 0 : index
    %c0_4 = arith.constant 0 : index
    %3 = vector.load %arg4[%c0_2, %c0_3, %c0_4] : memref<2x6x12xf32, #tpu.memory_space<vmem>>, vector<2x1x12xf32>
    tpu.vector_store %arg4[%c0_2, %c0_3, %c0_4], %2 {strides = array<i32>} : memref<2x6x12xf32, #tpu.memory_space<vmem>>, vector<2x1x12xf32>,
    %c1 = arith.constant 1 : index
    %4 = memref.load %arg2[%c1] : memref<6xi32, #tpu.memory_space<smem>>
    %c0_5 = arith.constant 0 : index
    %5 = arith.index_cast %4 : i32 to index
    %c0_6 = arith.constant 0 : index
    %6 = vector.load %arg3[%c0_5, %5, %c0_6] : memref<2x6x12xf32, #tpu.memory_space<vmem>>, vector<2x1x12xf32>
    %c0_7 = arith.constant 0 : index
    %c1_8 = arith.constant 1 : index
    %c0_9 = arith.constant 0 : index
    %7 = vector.load %arg4[%c0_7, %c1_8, %c0_9] : memref<2x6x12xf32, #tpu.memory_space<vmem>>, vector<2x1x12xf32>
    tpu.vector_store %arg4[%c0_7, %c1_8, %c0_9], %6 {strides = array<i32>} : memref<2x6x12xf32, #tpu.memory_space<vmem>>, vector<2x1x12xf32>,
    %c2 = arith.constant 2 : index
    %8 = memref.load %arg2[%c2] : memref<6xi32, #tpu.memory_space<smem>>
    %c0_10 = arith.constant 0 : index
    %9 = arith.index_cast %8 : i32 to index
    %c0_11 = arith.constant 0 : index
    %10 = vector.load %arg3[%c0_10, %9, %c0_11] : memref<2x6x12xf32, #tpu.memory_space<vmem>>, vector<2x1x12xf32>
    %c0_12 = arith.constant 0 : index
    %c2_13 = arith.constant 2 : index
    %c0_14 = arith.constant 0 : index
    %11 = vector.load %arg4[%c0_12, %c2_13, %c0_14] : memref<2x6x12xf32, #tpu.memory_space<vmem>>, vector<2x1x12xf32>
    tpu.vector_store %arg4[%c0_12, %c2_13, %c0_14], %10 {strides = array<i32>} : memref<2x6x12xf32, #tpu.memory_space<vmem>>, vector<2x1x12xf32>,
    %c3 = arith.constant 3 : index
    %12 = memref.load %arg2[%c3] : memref<6xi32, #tpu.memory_space<smem>>
    %c0_15 = arith.constant 0 : index
    %13 = arith.index_cast %12 : i32 to index
    %c0_16 = arith.constant 0 : index
    %14 = vector.load %arg3[%c0_15, %13, %c0_16] : memref<2x6x12xf32, #tpu.memory_space<vmem>>, vector<2x1x12xf32>
    %c0_17 = arith.constant 0 : index
    %c3_18 = arith.constant 3 : index
    %c0_19 = arith.constant 0 : index
    %15 = vector.load %arg4[%c0_17, %c3_18, %c0_19] : memref<2x6x12xf32, #tpu.memory_space<vmem>>, vector<2x1x12xf32>
    tpu.vector_store %arg4[%c0_17, %c3_18, %c0_19], %14 {strides = array<i32>} : memref<2x6x12xf32, #tpu.memory_space<vmem>>, vector<2x1x12xf32>,
    %c4 = arith.constant 4 : index
    %16 = memref.load %arg2[%c4] : memref<6xi32, #tpu.memory_space<smem>>
    %c0_20 = arith.constant 0 : index
    %17 = arith.index_cast %16 : i32 to index
    %c0_21 = arith.constant 0 : index
    %18 = vector.load %arg3[%c0_20, %17, %c0_21] : memref<2x6x12xf32, #tpu.memory_space<vmem>>, vector<2x1x12xf32>
    %c0_22 = arith.constant 0 : index
    %c4_23 = arith.constant 4 : index
    %c0_24 = arith.constant 0 : index
    %19 = vector.load %arg4[%c0_22, %c4_23, %c0_24] : memref<2x6x12xf32, #tpu.memory_space<vmem>>, vector<2x1x12xf32>
    tpu.vector_store %arg4[%c0_22, %c4_23, %c0_24], %18 {strides = array<i32>} : memref<2x6x12xf32, #tpu.memory_space<vmem>>, vector<2x1x12xf32>,
    %c5 = arith.constant 5 : index
    %20 = memref.load %arg2[%c5] : memref<6xi32, #tpu.memory_space<smem>>
    %c0_25 = arith.constant 0 : index
    %21 = arith.index_cast %20 : i32 to index
    %c0_26 = arith.constant 0 : index
    %22 = vector.load %arg3[%c0_25, %21, %c0_26] : memref<2x6x12xf32, #tpu.memory_space<vmem>>, vector<2x1x12xf32>
    %c0_27 = arith.constant 0 : index
    %c5_28 = arith.constant 5 : index
    %c0_29 = arith.constant 0 : index
    %23 = vector.load %arg4[%c0_27, %c5_28, %c0_29] : memref<2x6x12xf32, #tpu.memory_space<vmem>>, vector<2x1x12xf32>
    tpu.vector_store %arg4[%c0_27, %c5_28, %c0_29], %22 {strides = array<i32>} : memref<2x6x12xf32, #tpu.memory_space<vmem>>, vector<2x1x12xf32>,
    return
  }
  func.func @transform_0(%arg0: i32, %arg1: i32, %arg2: memref<6xi32, #tpu.memory_space<smem>>) -> (i32, i32, i32) {
    %c0_i32 = arith.constant 0 : i32
    %c0_i32_0 = arith.constant 0 : i32
    return %arg0, %c0_i32, %arg1 : i32, i32, i32
  }
  func.func @transform_1(%arg0: i32, %arg1: i32, %arg2: memref<6xi32, #tpu.memory_space<smem>>) -> (i32, i32, i32) {
    %c0_i32 = arith.constant 0 : i32
    %c0_i32_0 = arith.constant 0 : i32
    return %arg0, %c0_i32, %arg1 : i32, i32, i32
  }
}

</mosaic_0001>

<bundles_post_ra>
// kernel: tpu_custom_call.1
= control target key start
LH: loop header
LB: loop body
LE: loop exit
PB: predicated region body
PF: predicated region fallthrough
CT: control target
= control target key end

     0   :  { %s167_s0 = inlined_call_operand.vmem [shape: s32[6], index: 0, kind: input, shape index: {}]   ;;  %s168_s1 = inlined_call_operand.vmem [shape: f32[2,6,12], index: 1, kind: input, shape index: {}]   ;;  %s169_s2 = inlined_call_operand.vmem [shape: f32[2,6,12], index: 2, kind: output, shape index: {}]  }
   0x1   :  { %s7_s11 = sshll.u32 %s167_s0, 4  ;;  %s8_s11 = int_to_ptr.vmem [resolvable:$true] %s7_s11 }
   0x2   :  { %s68_s12 = scalar_lea.vmem %s8_s11, 16  ;;  %p73_p1 = scmp.lt.s32.totalorder %s8_s11, %s8_s11 }
   0x3   :  { %p69_p0 = scmp.ne.s32.totalorder %s8_s11, %s68_s12  ;;  %p74_p2 = scmp.lt.s32.totalorder %s68_s12, %s68_s12 }
   0x5   :  { %p75_p3 = por %p74_p2, %p73_p1 }
   0x7   :  { %p76_p4 = pnand %p75_p3, %p69_p0 }
   0x9   :  { %79 = shalt.err (!%p76_p4)  }
   0xa   :  { %s82_s13 = smov [#allocation3]  }
   0xb   :  { %10 = dma.vmem_to_smem %s8_s11, 16, %s82_s13, [#allocation2] }
   0xc   :  { %80 = dma.done.wait [#allocation2], 16 }
   0xd   :  { %81 = vsyncadd [#allocation2], 4294967280 }
   0xe   :  { %12 = sfence }
   0xf   :  { %s15_s14 = sld [smem:[#allocation3]]  ;;  %vm19_vm0 = vcmask 90112  }
  0x10   :  { %s62_s15 = sld [smem:[#allocation3 + $0x1]] }
  0x11   :  { %s63_s16 = sld [smem:[#allocation3 + $0x2]] }
  0x12   :  { %s64_s17 = sld [smem:[#allocation3 + $0x3]] }
  0x13   :  { %s65_s18 = sld [smem:[#allocation3 + $0x4]] }
  0x14   :  { %s66_s0 = sld [smem:[#allocation3 + $0x5]] }
  0x15   :  { %s16_s21 = scalar_lea.vmem %s168_s1, %s15_s14 }
  0x16   :  { %v17_v0 = vld [vmem:[%s16_s21] sm:$0x1]  ;;  %v18_v1 = vld [vmem:[%s16_s21 + $0x8] sm:$0x1]  ;;  %s23_s24 = scalar_lea.vmem %s168_s1, %s62_s15 }
  0x17   :  { %20 = vst.msk [vmem:[%s169_s2] sm:$0x1] %vm19_vm0, %v17_v0  ;;  %21 = vst.msk [vmem:[%s169_s2 + $0x8] sm:$0x1] %vm19_vm0, %v18_v1  ;;  %v24_v2 = vld [vmem:[%s23_s24] sm:$0x1]  ;;  %s29_s3 = scalar_lea.vmem %s168_s1, %s63_s16 }
  0x18   :  { %v25_v3 = vld [vmem:[%s23_s24 + $0x8] sm:$0x1]  ;;  %26 = vst.msk [vmem:[%s169_s2 + $0x1] sm:$0x1] %vm19_vm0, %v24_v2  ;;  %v30_v4 = vld [vmem:[%s29_s3] sm:$0x1]  ;;  %s35_s10 = scalar_lea.vmem %s168_s1, %s64_s17 }
  0x19   :  { %27 = vst.msk [vmem:[%s169_s2 + $0x9] sm:$0x1] %vm19_vm0, %v25_v3  ;;  %v31_v5 = vld [vmem:[%s29_s3 + $0x8] sm:$0x1]  ;;  %32 = vst.msk [vmem:[%s169_s2 + $0x2] sm:$0x1] %vm19_vm0, %v30_v4  ;;  %s41_s19 = scalar_lea.vmem %s168_s1, %s65_s18 }
  0x1a   :  { %33 = vst.msk [vmem:[%s169_s2 + $0xa] sm:$0x1] %vm19_vm0, %v31_v5  ;;  %v36_v6 = vld [vmem:[%s35_s10] sm:$0x1]  ;;  %v37_v7 = vld [vmem:[%s35_s10 + $0x8] sm:$0x1]  ;;  %s47_s25 = scalar_lea.vmem %s168_s1, %s66_s0 }
  0x1b   :  { %38 = vst.msk [vmem:[%s169_s2 + $0x3] sm:$0x1] %vm19_vm0, %v36_v6  ;;  %39 = vst.msk [vmem:[%s169_s2 + $0xb] sm:$0x1] %vm19_vm0, %v37_v7  ;;  %v42_v8 = vld [vmem:[%s41_s19] sm:$0x1] }
  0x1c   :  { %v43_v9 = vld [vmem:[%s41_s19 + $0x8] sm:$0x1]  ;;  %44 = vst.msk [vmem:[%s169_s2 + $0x4] sm:$0x1] %vm19_vm0, %v42_v8  ;;  %v48_v10 = vld [vmem:[%s47_s25] sm:$0x1] }
  0x1d   :  { %45 = vst.msk [vmem:[%s169_s2 + $0xc] sm:$0x1] %vm19_vm0, %v43_v9  ;;  %v49_v11 = vld [vmem:[%s47_s25 + $0x8] sm:$0x1]  ;;  %50 = vst.msk [vmem:[%s169_s2 + $0x5] sm:$0x1] %vm19_vm0, %v48_v10 }
  0x1e   :  { %51 = vst.msk [vmem:[%s169_s2 + $0xd] sm:$0x1] %vm19_vm0, %v49_v11 }

</bundles_post_ra>
